<compile_context>
chip_gen: v6e
topology: v6e:2x2x1
jax: 0.10.0
libtpu: 0.0.40
codegen_flags: <defaults>
</compile_context>

<pallas_src>
import functools

import jax
import jax.numpy as jnp
from jax.experimental import pallas as pl
from jax.experimental.pallas import tpu as pltpu


# Inputs smaller than this (elements) skip Pallas entirely: launch/DMA
# overhead dominates and XLA fuses tiny elementwise ops for free.
_SMALL_BYPASS_ELEMS = 1 << 17  # 128K elements

# Per-tile VMEM byte budget.  Measured tiling data: >=85% of the HBM roofline
# at 1-4 MiB blocks; in+out double buffers => ~4x this in VMEM (~16 MiB).
_TILE_BYTE_BUDGET = 4 * 1024 * 1024

_COLS_CANDIDATES = (4096, 2048, 1024, 512, 256, 128)


def _sublane_multiple(dtype) -> int:
    # Full unpacked sublane group per 32-bit word: f32 -> 8, bf16 -> 16,
    # int8/fp8 -> 32.  Keeps loads/stores as full unmasked vreg traffic.
    itemsize = jnp.dtype(dtype).itemsize
    return 8 * max(1, 4 // itemsize)


def _choose_cols(total: int, sub: int):
    """Widest lane count keeping rows sublane-aligned; else merely 128-divisible."""
    for c in _COLS_CANDIDATES:
        if total % (c * sub) == 0:
            return c, True
    for c in _COLS_CANDIDATES:
        if total % c == 0:
            return c, False
    return None, False


def _apply_fn_kernel(fn, compute_in_bf16, x_ref, o_ref):
    x = x_ref[...]
    if compute_in_bf16 and x.dtype == jnp.float32:
        # Opt-in bf16 EUP/VPU compute (not bit-exact): ~2x transcendental
        # throughput on v6e/v7x.  NOTE: v5e's VPU/EUP have no bf16 support, so
        # on v5e this only adds conversion work — the real v5e lever is a
        # caller-side bf16 storage dtype (halves HBM traffic), not this cast.
        y = fn(x.astype(jnp.bfloat16))
    else:
        y = fn(x)
    o_ref[...] = y.astype(o_ref.dtype)
    # TODO(synk): for multi-op fns (gelu/erf chains), inspect a bundle dump for
    # VMEM spills at this tile size; if present, halve row_tile (not cols) or
    # stripe the tile with lax.fori_loop(..., unroll=True).


def _cost_estimate(fn, shape, dtype):
    total = shape[0] * shape[1]
    itemsize = jnp.dtype(dtype).itemsize
    try:
        # Reflects the actual fn (does not over-declare transcendentals for
        # cheap fns like relu/scale).
        return pl.estimate_cost(fn, jax.ShapeDtypeStruct(shape, dtype))
    except Exception:
        return pl.CostEstimate(flops=total, transcendentals=0,
                               bytes_accessed=2 * total * itemsize)


def _pallas_apply_2d(fn, x2d, row_tile, *, compute_in_bf16=False):
    rows, cols = x2d.shape
    itemsize = jnp.dtype(x2d.dtype).itemsize
    assert cols % 128 == 0
    assert row_tile == rows or row_tile % _sublane_multiple(x2d.dtype) == 0

    tile_bytes = row_tile * cols * itemsize
    # Double-buffered input + output plus slack: ~20 MiB for a 4 MiB tile —
    # comfortable inside v7x's 64 MiB physical / 32 MiB scoped VMEM.
    vmem_limit = int(4 * tile_bytes + (4 << 20))

    kernel = functools.partial(_apply_fn_kernel, fn, compute_in_bf16)
    return pl.pallas_call(
        kernel,
        out_shape=jax.ShapeDtypeStruct((rows, cols), x2d.dtype),
        grid_spec=pltpu.PrefetchScalarGridSpec(
            num_scalar_prefetch=0,
            # cdiv grid: a ragged final block is masked by the Pallas pipeline
            # (only in-bounds rows are DMA'd in/out) — no host-side pad/slice.
            grid=(pl.cdiv(rows, row_tile),),
            in_specs=[pl.BlockSpec((row_tile, cols), lambda i: (i, 0))],
            out_specs=pl.BlockSpec((row_tile, cols), lambda i: (i, 0)),
        ),
        # No input_output_aliases: operand is a reshape of the caller's
        # (non-donated) array; aliasing would force a defensive copy and only
        # saves footprint, never bandwidth, on this op.
        compiler_params=pltpu.CompilerParams(
            # TODO(synk): on v7x, verify in a profile that both TensorCores
            # are active; if not, switch to pltpu.CORE_PARALLEL / core_map.
            dimension_semantics=("parallel",),
            vmem_limit_bytes=vmem_limit,
        ),
        cost_estimate=_cost_estimate(fn, (rows, cols), x2d.dtype),
    )(x2d)


class ApplyFunction:
    """JAX/Pallas port of idiaptts rnn_dyn ApplyFunction.

    forward(x) = fn(x) when (apply_during_testing or training), else x.

    WARNING: the Pallas fast path flattens the input into (rows, cols) tiles,
    so `fn` must be strictly elementwise (no axis semantics).  Shape/dtype-
    changing fns fall back to a direct fn(x) call automatically; shape-
    preserving but axis-dependent fns (softmax, layernorm over channels) are
    outside this contract and must not be used with the Pallas path.
    """

    def __init__(self, fn, apply_during_testing: bool = True,
                 compute_in_bf16: bool = False):
        self.fn = fn
        self.apply_during_testing = apply_during_testing
        # Opt-in: compute fn in bf16 inside the kernel (f32 HBM I/O kept).
        # ~2x for EUP-heavy fns on v6e/v7x; keep False on v5e (no bf16 EUP).
        self.compute_in_bf16 = compute_in_bf16
        self.training = True  # mirror nn.Module default

    def eval(self):
        self.training = False
        return self

    def train(self, mode: bool = True):
        self.training = mode
        return self

    def __call__(self, input_):
        if self.apply_during_testing or self.training:
            return self._apply(input_)
        return input_

    def _apply(self, x):
        total = int(x.size)
        # Small inputs: let XLA fuse; Pallas launch overhead would dominate.
        if total < _SMALL_BYPASS_ELEMS:
            return self.fn(x)

        # Guard the flattened path: fn must preserve shape & dtype.
        try:
            out_aval = jax.eval_shape(
                self.fn, jax.ShapeDtypeStruct(x.shape, x.dtype))
            shape_ok = (out_aval.shape == x.shape and out_aval.dtype == x.dtype)
        except Exception:
            shape_ok = False
        if not shape_ok:
            return self.fn(x)

        itemsize = jnp.dtype(x.dtype).itemsize
        sub = _sublane_multiple(x.dtype)
        cols, aligned = _choose_cols(total, sub)
        if cols is None:
            # total is not a multiple of 128.  Any host-side re-blocking
            # (pad+slice or prefix+concat) adds a full extra HBM copy to a
            # purely bandwidth-bound op, so hand it to XLA's fused elementwise
            # kernel (itself near the HBM roofline) instead.
            # TODO(synk): an in-kernel masked 1-D tail (manual DMA with an
            # overlapped final chunk) could recover the Pallas path here.
            return self.fn(x)

        rows = total // cols
        max_tile_rows = max(
            sub, (_TILE_BYTE_BUDGET // (cols * itemsize)) // sub * sub)
        if aligned:
            # No divisor search (it could degenerate to 8-row / 128 KiB
            # tiles): always take the full budget-sized tile; the cdiv grid
            # masks a ragged final block with zero extra HBM traffic.
            row_tile = min(max_tile_rows, rows)
        elif rows * cols * itemsize <= _TILE_BYTE_BUDGET:
            row_tile = rows  # single full-extent block (grid of 1)
        else:
            # rows not sublane-aligned and too large for one block.
            # TODO(synk): could be covered via masked partial blocks too.
            return self.fn(x)

        x2d = x.reshape(rows, cols)  # contiguous row-major reshape: free
        y2d = _pallas_apply_2d(self.fn, x2d, row_tile,
                               compute_in_bf16=self.compute_in_bf16)
        return y2d.reshape(x.shape)


if __name__ == "__main__":
    key = jax.random.PRNGKey(0)
    k1, k2, k3, k4 = jax.random.split(key, 4)
    fn = jnp.tanh

    module = ApplyFunction(fn, apply_during_testing=True)

    # 1) Small NCHW feature map: small-input bypass + eval / passthrough modes.
    x_small = jax.random.normal(k1, (2, 4, 16, 16), dtype=jnp.float32)
    y_small = jax.block_until_ready(module(x_small))
    assert y_small.shape == x_small.shape and y_small.dtype == x_small.dtype
    assert jnp.allclose(y_small, jnp.tanh(x_small), atol=1e-5, rtol=1e-5)

    module.eval()
    y_eval = jax.block_until_ready(module(x_small))
    assert jnp.allclose(y_eval, jnp.tanh(x_small), atol=1e-5, rtol=1e-5)

    passthrough = ApplyFunction(fn, apply_during_testing=False).eval()
    y_id = jax.block_until_ready(passthrough(x_small))
    assert jnp.array_equal(y_id, x_small)
    module.train()

    # 2) 1 MiB feature map: single lane-dense (64, 4096) tile through Pallas.
    x_big = jax.random.normal(k2, (4, 16, 64, 64), dtype=jnp.float32)
    y_big = jax.block_until_ready(module(x_big))
    assert jnp.allclose(y_big, jnp.tanh(x_big), atol=1e-5, rtol=1e-5)

    # 3) Multi-tile grid with a ragged final block (row_tile forced small so
    #    the test stays tiny): rows=40, row_tile=32 -> grid=2, final block has
    #    only 8 valid rows, handled by the cdiv-grid masking (no pad/slice).
    x2d = jax.random.normal(k3, (40, 256), dtype=jnp.float32)
    y2d = jax.block_until_ready(_pallas_apply_2d(fn, x2d, 32))
    assert jnp.allclose(y2d, jnp.tanh(x2d), atol=1e-5, rtol=1e-5)

    # 4) Ragged total (not a multiple of 128): copy-free XLA fallback path.
    x_rag = jax.random.normal(k4, (3, 7, 97, 151), dtype=jnp.float32)
    y_rag = jax.block_until_ready(module(x_rag))
    assert jnp.allclose(y_rag, jnp.tanh(x_rag), atol=1e-5, rtol=1e-5)

    # 5) Opt-in bf16 in-kernel compute (v6e/v7x EUP lever); not bit-exact.
    module_bf16 = ApplyFunction(fn, apply_during_testing=True,
                                compute_in_bf16=True)
    y_bf16 = jax.block_until_ready(module_bf16(x_big))
    assert y_bf16.dtype == x_big.dtype
    assert jnp.allclose(y_bf16, jnp.tanh(x_big), atol=5e-2, rtol=5e-2)

    print("KERNEL_OK")
</pallas_src>

<mosaic_0001>
module attributes {stable_mosaic.version = 11 : i64} {
  func.func @_apply_fn_kernel(%arg0: i32, %arg1: memref<64x4096xf32, #tpu.memory_space<vmem>>, %arg2: memref<64x4096xf32, #tpu.memory_space<vmem>>) attributes {dimension_semantics = [#tpu.dimension_semantics<parallel>], iteration_bounds = array<i64: 1>, scalar_prefetch = 0 : i64, scratch_operands = 0 : i64, tpu.core_type = #tpu.core_type<tc>, window_params = [{transform_indices = @transform_0, window_bounds = array<i64: 64, 4096>}, {transform_indices = @transform_1, window_bounds = array<i64: 64, 4096>}]} {
    %c0 = arith.constant 0 : index
    %c0_0 = arith.constant 0 : index
    %0 = vector.load %arg1[%c0, %c0_0] : memref<64x4096xf32, #tpu.memory_space<vmem>>, vector<64x4096xf32>
    %1 = math.tanh %0 : vector<64x4096xf32>
    %c0_1 = arith.constant 0 : index
    %c0_2 = arith.constant 0 : index
    %2 = vector.load %arg2[%c0_1, %c0_2] : memref<64x4096xf32, #tpu.memory_space<vmem>>, vector<64x4096xf32>
    tpu.vector_store %arg2[%c0_1, %c0_2], %1 {strides = array<i32>} : memref<64x4096xf32, #tpu.memory_space<vmem>>, vector<64x4096xf32>,
    return
  }
  func.func @transform_0(%arg0: i32) -> (i32, i32) {
    %c0_i32 = arith.constant 0 : i32
    %c0_i32_0 = arith.constant 0 : i32
    return %arg0, %c0_i32 : i32, i32
  }
  func.func @transform_1(%arg0: i32) -> (i32, i32) {
    %c0_i32 = arith.constant 0 : i32
    %c0_i32_0 = arith.constant 0 : i32
    return %arg0, %c0_i32 : i32, i32
  }
}

</mosaic_0001>

<bundles_post_ra>
// kernel: tpu_custom_call.1
= control target key start
LH: loop header
LB: loop body
LE: loop exit
PB: predicated region body
PF: predicated region fallthrough
CT: control target
= control target key end

     0   :  { %6 = vsyncpa [#allocation3], 0  ;;  %s1394_s0 = inlined_call_operand.hbm [shape: f32[64,4096], index: 0, kind: input, shape index: {}]   ;;  %s1395_s1 = inlined_call_operand.hbm [shape: f32[64,4096], index: 1, kind: output, shape index: {}]  }
   0x1   :  { %7 = vsyncpa [#allocation4], 0  ;;  %s1368_s6 = smov [#allocation2]  }
   0x2   :  { %s13_s7 = sshll.u32 %s1368_s6, 4  ;;  %s14_s7 = int_to_ptr.vmem [resolvable:$true] %s13_s7 }
   0x3   :  { %s1332_s8 = scalar_lea.vmem %s14_s7, 32768  ;;  %p1337_p1 = scmp.lt.s32.totalorder %s14_s7, %s14_s7 }
   0x4   :  { %p1333_p0 = scmp.ne.s32.totalorder %s14_s7, %s1332_s8  ;;  %p1338_p2 = scmp.lt.s32.totalorder %s1332_s8, %s1332_s8 }
   0x6   :  { %p1339_p3 = por %p1338_p2, %p1337_p1 }
   0x8   :  { %p1340_p4 = pnand %p1339_p3, %p1333_p0 }
   0xa   :  { %1343 = shalt.err (!%p1340_p4)
}
   0xb   :  { %s1369_s9 = smov 4096   ;;  %s1370_s10 = smov 256  }
   0xc   :  { %19 = dma.hbm_to_vmem [thread:$0]  %s1394_s0, 32768, %s14_s7, [#allocation3], %s1369_s9, %s1369_s9, %s1370_s10  }
   0xd   :  { %1364 = dma.done.wait [#allocation3], 32768  }
   0xe   :  { %1365 = vsyncadd [#allocation3], 4294934528  ;;  %v23_v0 = vld [vmem:[#allocation2] sm:$0xff]  ;;  %v24_v1 = vld [vmem:[#allocation2 + $0x8] sm:$0xff]  ;;  %s1371_s0 = smov [#allocation5]  }
   0xf   :  { %v25_v2 = vld [vmem:[#allocation2 + $0x10] sm:$0xff]  ;;  %812 = vtanh.f32 %v23_v0  ;;  %v26_v3 = vld [vmem:[#allocation2 + $0x18] sm:$0xff]  ;;  %v27_v4 = vld [vmem:[#allocation2 + $0x20] sm:$0xff]  ;;  %s796_s13 = sshll.u32 %s1371_s0, 4  ;;  %s797_s13 = int_to_ptr.vmem [resolvable:$true] %s796_s13 }
  0x10   :  { %814 = vtanh.f32 %v24_v1  ;;  %v28_v5 = vld [vmem:[#allocation2 + $0x28] sm:$0xff]  ;;  %v29_v6 = vld [vmem:[#allocation2 + $0x30] sm:$0xff]  ;;  %v30_v7 = vld [vmem:[#allocation2 + $0x38] sm:$0xff]  ;;  %s1344_s14 = scalar_lea.vmem %s797_s13, 32768  ;;  %p1349_p6 = scmp.lt.s32.totalorder %s797_s13, %s797_s13 }
  0x11   :  { %816 = vtanh.f32 %v25_v2  ;;  %v31_v8 = vld [vmem:[#allocation2 + $0x40] sm:$0xff]  ;;  %v32_v9 = vld [vmem:[#allocation2 + $0x48] sm:$0xff]  ;;  %v33_v10 = vld [vmem:[#allocation2 + $0x50] sm:$0xff]  ;;  %p1345_p5 = scmp.ne.s32.totalorder %s797_s13, %s1344_s14  ;;  %p1350_p7 = scmp.lt.s32.totalorder %s1344_s14, %s1344_s14 }
  0x12   :  { %818 = vtanh.f32 %v26_v3  ;;  %v34_v11 = vld [vmem:[#allocation2 + $0x58] sm:$0xff]  ;;  %v35_v12 = vld [vmem:[#allocation2 + $0x60] sm:$0xff]  ;;  %v36_v13 = vld [vmem:[#allocation2 + $0x68] sm:$0xff] }
  0x13   :  { %820 = vtanh.f32 %v27_v4  ;;  %v37_v14 = vld [vmem:[#allocation2 + $0x70] sm:$0xff]  ;;  %v38_v15 = vld [vmem:[#allocation2 + $0x78] sm:$0xff]  ;;  %v39_v17 = vld [vmem:[#allocation2 + $0x80] sm:$0xff]  ;;  %p1351_p8 = por %p1350_p7, %p1349_p6 }
  0x14   :  { %822 = vtanh.f32 %v28_v5  ;;  %v40_v19 = vld [vmem:[#allocation2 + $0x88] sm:$0xff]  ;;  %v41_v21 = vld [vmem:[#allocation2 + $0x90] sm:$0xff]  ;;  %v42_v23 = vld [vmem:[#allocation2 + $0x98] sm:$0xff] }
  0x15   :  { %824 = vtanh.f32 %v29_v6  ;;  %v43_v25 = vld [vmem:[#allocation2 + $0xa0] sm:$0xff]  ;;  %v44_v27 = vld [vmem:[#allocation2 + $0xa8] sm:$0xff]  ;;  %v45_v29 = vld [vmem:[#allocation2 + $0xb0] sm:$0xff]  ;;  %p1352_p9 = pnand %p1351_p8, %p1345_p5 }
  0x16   :  { %826 = vtanh.f32 %v30_v7  ;;  %v46_v31 = vld [vmem:[#allocation2 + $0xb8] sm:$0xff]  ;;  %v47_v33 = vld [vmem:[#allocation2 + $0xc0] sm:$0xff]  ;;  %v48_v35 = vld [vmem:[#allocation2 + $0xc8] sm:$0xff] }
  0x17   :  { %828 = vtanh.f32 %v31_v8  ;;  %v49_v37 = vld [vmem:[#allocation2 + $0xd0] sm:$0xff]  ;;  %v50_v39 = vld [vmem:[#allocation2 + $0xd8] sm:$0xff]  ;;  %v51_v41 = vld [vmem:[#allocation2 + $0xe0] sm:$0xff] }
  0x18   :  { %830 = vtanh.f32 %v32_v9  ;;  %v52_v43 = vld [vmem:[#allocation2 + $0xe8] sm:$0xff]  ;;  %v53_v45 = vld [vmem:[#allocation2 + $0xf0] sm:$0xff]  ;;  %v54_v47 = vld [vmem:[#allocation2 + $0xf8] sm:$0xff] }
  0x19   :  { %832 = vtanh.f32 %v33_v10  ;;  %v55_v49 = vld [vmem:[#allocation2 + $0x100] sm:$0xff]  ;;  %v56_v51 = vld [vmem:[#allocation2 + $0x108] sm:$0xff]  ;;  %v57_v53 = vld [vmem:[#allocation2 + $0x110] sm:$0xff] }
  0x1a   :  { %834 = vtanh.f32 %v34_v11  ;;  %v58_v55 = vld [vmem:[#allocation2 + $0x118] sm:$0xff]  ;;  %v59_v57 = vld [vmem:[#allocation2 + $0x120] sm:$0xff]  ;;  %v60_v59 = vld [vmem:[#allocation2 + $0x128] sm:$0xff] }
  0x1b   :  { %836 = vtanh.f32 %v35_v12  ;;  %v61_v61 = vld [vmem:[#allocation2 + $0x130] sm:$0xff]  ;;  %v62_v63 = vld [vmem:[#allocation2 + $0x138] sm:$0xff]  ;;  %v63_v1 = vld [vmem:[#allocation2 + $0x140] sm:$0xff] }
  0x1c   :  { %v813_v16 = vpop.eup %812  ;;  %838 = vtanh.f32 %v36_v13  ;;  %v64_v3 = vld [vmem:[#allocation2 + $0x148] sm:$0xff]  ;;  %v65_v5 = vld [vmem:[#allocation2 + $0x150] sm:$0xff]  ;;  %v66_v7 = vld [vmem:[#allocation2 + $0x158] sm:$0xff] }
  0x1d   :  { %v815_v18 = vpop.eup %814  ;;  %535 = vst [vmem:[#allocation5] sm:$0xff] %v813_v16  ;;  %840 = vtanh.f32 %v37_v14  ;;  %v67_v9 = vld [vmem:[#allocation2 + $0x160] sm:$0xff]  ;;  %v68_v11 = vld [vmem:[#allocation2 + $0x168] sm:$0xff]  ;;  %v69_v13 = vld [vmem:[#allocation2 + $0x170] sm:$0xff] }
  0x1e   :  { %v817_v20 = vpop.eup %816  ;;  %536 = vst [vmem:[#allocation5 + $0x8] sm:$0xff] %v815_v18  ;;  %842 = vtanh.f32 %v38_v15  ;;  %v70_v15 = vld [vmem:[#allocation2 + $0x178] sm:$0xff] }
  0x1f   :  { %v819_v22 = vpop.eup %818  ;;  %537 = vst [vmem:[#allocation5 + $0x10] sm:$0xff] %v817_v20  ;;  %844 = vtanh.f32 %v39_v17  ;;  %v71_v17 = vld [vmem:[#allocation2 + $0x180] sm:$0xff] }
  0x20   :  { %v821_v24 = vpop.eup %820  ;;  %538 = vst [vmem:[#allocation5 + $0x18] sm:$0xff] %v819_v22  ;;  %846 = vtanh.f32 %v40_v19  ;;  %v72_v19 = vld [vmem:[#allocation2 + $0x188] sm:$0xff] }
  0x21   :  { %v823_v26 = vpop.eup %822  ;;  %539 = vst [vmem:[#allocation5 + $0x20] sm:$0xff] %v821_v24  ;;  %848 = vtanh.f32 %v41_v21  ;;  %v73_v21 = vld [vmem:[#allocation2 + $0x190] sm:$0xff] }
  0x22   :  { %v825_v28 = vpop.eup %824  ;;  %540 = vst [vmem:[#allocation5 + $0x28] sm:$0xff] %v823_v26  ;;  %850 = vtanh.f32 %v42_v23  ;;  %v74_v23 = vld [vmem:[#allocation2 + $0x198] sm:$0xff] }
  0x23   :  { %v827_v30 = vpop.eup %826  ;;  %541 = vst [vmem:[#allocation5 + $0x30] sm:$0xff] %v825_v28  ;;  %852 = vtanh.f32 %v43_v25  ;;  %v75_v25 = vld [vmem:[#allocation2 + $0x1a0] sm:$0xff] }
  0x24   :  { %v829_v32 = vpop.eup %828  ;;  %542 = vst [vmem:[#allocation5 + $0x38] sm:$0xff] %v827_v30  ;;  %854 = vtanh.f32 %v44_v27  ;;  %v76_v27 = vld [vmem:[#allocation2 + $0x1a8] sm:$0xff] }
  0x25   :  { %v831_v34 = vpop.eup %830  ;;  %543 = vst [vmem:[#allocation5 + $0x40] sm:$0xff] %v829_v32  ;;  %856 = vtanh.f32 %v45_v29  ;;  %v77_v29 = vld [vmem:[#allocation2 + $0x1b0] sm:$0xff] }
  0x26   :  { %v833_v36 = vpop.eup %832  ;;  %544 = vst [vmem:[#allocation5 + $0x48] sm:$0xff] %v831_v34  ;;  %858 = vtanh.f32 %v46_v31  ;;  %v78_v31 = vld [vmem:[#allocation2 + $0x1b8] sm:$0xff] }
  0x27   :  { %v835_v38 = vpop.eup %834  ;;  %545 = vst [vmem:[#allocation5 + $0x50] sm:$0xff] %v833_v36  ;;  %860 = vtanh.f32 %v47_v33  ;;  %v79_v33 = vld [vmem:[#allocation2 + $0x1c0] sm:$0xff] }
  0x28   :  { %v837_v40 = vpop.eup %836  ;;  %546 = vst [vmem:[#allocation5 + $0x58] sm:$0xff] %v835_v38  ;;  %862 = vtanh.f32 %v48_v35  ;;  %v80_v35 = vld [vmem:[#allocation2 + $0x1c8] sm:$0xff] }
  0x29   :  { %v839_v42 = vpop.eup %838  ;;  %547 = vst [vmem:[#allocation5 + $0x60] sm:$0xff] %v837_v40  ;;  %864 = vtanh.f32 %v49_v37  ;;  %v81_v37 = vld [vmem:[#allocation2 + $0x1d0] sm:$0xff] }
  0x2a   :  { %v841_v44 = vpop.eup %840  ;;  %548 = vst [vmem:[#allocation5 + $0x68] sm:$0xff] %v839_v42  ;;  %866 = vtanh.f32 %v50_v39  ;;  %v82_v39 = vld [vmem:[#allocation2 + $0x1d8] sm:$0xff] }
  0x2b   :  { %v843_v46 = vpop.eup %842  ;;  %549 = vst [vmem:[#allocation5 + $0x70] sm:$0xff] %v841_v44  ;;  %868 = vtanh.f32 %v51_v41  ;;  %v83_v41 = vld [vmem:[#allocation2 + $0x1e0] sm:$0xff] }
  0x2c   :  { %v845_v48 = vpop.eup %844  ;;  %550 = vst [vmem:[#allocation5 + $0x78] sm:$0xff] %v843_v46  ;;  %870 = vtanh.f32 %v52_v43  ;;  %v84_v43 = vld [vmem:[#allocation2 + $0x1e8] sm:$0xff] }
  0x2d   :  { %v847_v50 = vpop.eup %846  ;;  %551 = vst [vmem:[#allocation5 + $0x80] sm:$0xff] %v845_v48  ;;  %872 = vtanh.f32 %v53_v45  ;;  %v85_v45 = vld [vmem:[#allocation2 + $0x1f0] sm:$0xff] }
  0x2e   :  { %v849_v52 = vpop.eup %848  ;;  %552 = vst [vmem:[#allocation5 + $0x88] sm:$0xff] %v847_v50  ;;  %874 = vtanh.f32 %v54_v47  ;;  %v86_v47 = vld [vmem:[#allocation2 + $0x1f8] sm:$0xff] }
  0x2f   :  { %v851_v54 = vpop.eup %850  ;;  %553 = vst [vmem:[#allocation5 + $0x90] sm:$0xff] %v849_v52  ;;  %876 = vtanh.f32 %v55_v49  ;;  %v87_v49 = vld [vmem:[#allocation2 + $0x200] sm:$0xff] }
  0x30   :  { %v853_v56 = vpop.eup %852  ;;  %554 = vst [vmem:[#allocation5 + $0x98] sm:$0xff] %v851_v54  ;;  %878 = vtanh.f32 %v56_v51  ;;  %v88_v51 = vld [vmem:[#allocation2 + $0x208] sm:$0xff] }
  0x31   :  { %v855_v58 = vpop.eup %854  ;;  %555 = vst [vmem:[#allocation5 + $0xa0] sm:$0xff] %v853_v56  ;;  %880 = vtanh.f32 %v57_v53  ;;  %v89_v53 = vld [vmem:[#allocation2 + $0x210] sm:$0xff] }
  0x32   :  { %v857_v60 = vpop.eup %856  ;;  %556 = vst [vmem:[#allocation5 + $0xa8] sm:$0xff] %v855_v58  ;;  %882 = vtanh.f32 %v58_v55  ;;  %v90_v55 = vld [vmem:[#allocation2 + $0x218] sm:$0xff] }
  0x33   :  { %v859_v62 = vpop.eup %858  ;;  %557 = vst [vmem:[#allocation5 + $0xb0] sm:$0xff] %v857_v60  ;;  %884 = vtanh.f32 %v59_v57  ;;  %v91_v57 = vld [vmem:[#allocation2 + $0x220] sm:$0xff] }
  0x34   :  { %v861_v0 = vpop.eup %860  ;;  %558 = vst [vmem:[#allocation5 + $0xb8] sm:$0xff] %v859_v62  ;;  %886 = vtanh.f32 %v60_v59  ;;  %v92_v59 = vld [vmem:[#allocation2 + $0x228] sm:$0xff] }
  0x35   :  { %v863_v2 = vpop.eup %862  ;;  %559 = vst [vmem:[#allocation5 + $0xc0] sm:$0xff] %v861_v0  ;;  %888 = vtanh.f32 %v61_v61  ;;  %v93_v61 = vld [vmem:[#allocation2 + $0x230] sm:$0xff] }
  0x36   :  { %v865_v4 = vpop.eup %864  ;;  %560 = vst [vmem:[#allocation5 + $0xc8] sm:$0xff] %v863_v2  ;;  %890 = vtanh.f32 %v62_v63  ;;  %v94_v63 = vld [vmem:[#allocation2 + $0x238] sm:$0xff] }
  0x37   :  { %v867_v6 = vpop.eup %866  ;;  %561 = vst [vmem:[#allocation5 + $0xd0] sm:$0xff] %v865_v4  ;;  %892 = vtanh.f32 %v63_v1  ;;  %v95_v1 = vld [vmem:[#allocation2 + $0x240] sm:$0xff] }
  0x38   :  { %v869_v8 = vpop.eup %868  ;;  %562 = vst [vmem:[#allocation5 + $0xd8] sm:$0xff] %v867_v6  ;;  %894 = vtanh.f32 %v64_v3  ;;  %v96_v3 = vld [vmem:[#allocation2 + $0x248] sm:$0xff] }
  0x39   :  { %v871_v10 = vpop.eup %870  ;;  %563 = vst [vmem:[#allocation5 + $0xe0] sm:$0xff] %v869_v8  ;;  %896 = vtanh.f32 %v65_v5  ;;  %v97_v5 = vld [vmem:[#allocation2 + $0x250] sm:$0xff] }
  0x3a   :  { %v873_v12 = vpop.eup %872  ;;  %564 = vst [vmem:[#allocation5 + $0xe8] sm:$0xff] %v871_v10  ;;  %898 = vtanh.f32 %v66_v7  ;;  %v98_v7 = vld [vmem:[#allocation2 + $0x258] sm:$0xff] }
  0x3b   :  { %v875_v14 = vpop.eup %874  ;;  %565 = vst [vmem:[#allocation5 + $0xf0] sm:$0xff] %v873_v12  ;;  %900 = vtanh.f32 %v67_v9  ;;  %v99_v9 = vld [vmem:[#allocation2 + $0x260] sm:$0xff] }
  0x3c   :  { %v877_v16 = vpop.eup %876  ;;  %566 = vst [vmem:[#allocation5 + $0xf8] sm:$0xff] %v875_v14  ;;  %902 = vtanh.f32 %v68_v11  ;;  %v100_v11 = vld [vmem:[#allocation2 + $0x268] sm:$0xff] }
  0x3d   :  { %v879_v18 = vpop.eup %878  ;;  %567 = vst [vmem:[#allocation5 + $0x100] sm:$0xff] %v877_v16  ;;  %904 = vtanh.f32 %v69_v13  ;;  %v101_v13 = vld [vmem:[#allocation2 + $0x270] sm:$0xff] }
  0x3e   :  { %v881_v20 = vpop.eup %880  ;;  %568 = vst [vmem:[#allocation5 + $0x108] sm:$0xff] %v879_v18  ;;  %906 = vtanh.f32 %v70_v15  ;;  %v102_v15 = vld [vmem:[#allocation2 + $0x278] sm:$0xff] }
  0x3f   :  { %v883_v22 = vpop.eup %882  ;;  %569 = vst [vmem:[#allocation5 + $0x110] sm:$0xff] %v881_v20  ;;  %908 = vtanh.f32 %v71_v17  ;;  %v103_v17 = vld [vmem:[#allocation2 + $0x280] sm:$0xff] }
  0x40   :  { %v885_v24 = vpop.eup %884  ;;  %570 = vst [vmem:[#allocation5 + $0x118] sm:$0xff] %v883_v22  ;;  %910 = vtanh.f32 %v72_v19  ;;  %v104_v19 = vld [vmem:[#allocation2 + $0x288] sm:$0xff] }
  0x41   :  { %v887_v26 = vpop.eup %886  ;;  %571 = vst [vmem:[#allocation5 + $0x120] sm:$0xff] %v885_v24  ;;  %912 = vtanh.f32 %v73_v21  ;;  %v105_v21 = vld [vmem:[#allocation2 + $0x290] sm:$0xff] }
  0x42   :  { %v889_v28 = vpop.eup %888  ;;  %572 = vst [vmem:[#allocation5 + $0x128] sm:$0xff] %v887_v26  ;;  %914 = vtanh.f32 %v74_v23  ;;  %v106_v23 = vld [vmem:[#allocation2 + $0x298] sm:$0xff] }
  0x43   :  { %v891_v30 = vpop.eup %890  ;;  %573 = vst [vmem:[#allocation5 + $0x130] sm:$0xff] %v889_v28  ;;  %916 = vtanh.f32 %v75_v25  ;;  %v107_v25 = vld [vmem:[#allocation2 + $0x2a0] sm:$0xff] }
  0x44   :  { %v893_v32 = vpop.eup %892  ;;  %574 = vst [vmem:[#allocation5 + $0x138] sm:$0xff] %v891_v30  ;;  %918 = vtanh.f32 %v76_v27  ;;  %v108_v27 = vld [vmem:[#allocation2 + $0x2a8] sm:$0xff] }
  0x45   :  { %v895_v34 = vpop.eup %894  ;;  %575 = vst [vmem:[#allocation5 + $0x140] sm:$0xff] %v893_v32  ;;  %920 = vtanh.f32 %v77_v29  ;;  %v109_v29 = vld [vmem:[#allocation2 + $0x2b0] sm:$0xff] }
  0x46   :  { %v897_v36 = vpop.eup %896  ;;  %576 = vst [vmem:[#allocation5 + $0x148] sm:$0xff] %v895_v34  ;;  %922 = vtanh.f32 %v78_v31  ;;  %v110_v31 = vld [vmem:[#allocation2 + $0x2b8] sm:$0xff] }
  0x47   :  { %v899_v38 = vpop.eup %898  ;;  %577 = vst [vmem:[#allocation5 + $0x150] sm:$0xff] %v897_v36  ;;  %924 = vtanh.f32 %v79_v33  ;;  %v111_v33 = vld [vmem:[#allocation2 + $0x2c0] sm:$0xff] }
  0x48   :  { %v901_v40 = vpop.eup %900  ;;  %578 = vst [vmem:[#allocation5 + $0x158] sm:$0xff] %v899_v38  ;;  %926 = vtanh.f32 %v80_v35  ;;  %v112_v35 = vld [vmem:[#allocation2 + $0x2c8] sm:$0xff] }
  0x49   :  { %v903_v42 = vpop.eup %902  ;;  %579 = vst [vmem:[#allocation5 + $0x160] sm:$0xff] %v901_v40  ;;  %928 = vtanh.f32 %v81_v37  ;;  %v113_v37 = vld [vmem:[#allocation2 + $0x2d0] sm:$0xff] }
  0x4a   :  { %v905_v44 = vpop.eup %904  ;;  %580 = vst [vmem:[#allocation5 + $0x168] sm:$0xff] %v903_v42  ;;  %930 = vtanh.f32 %v82_v39  ;;  %v114_v39 = vld [vmem:[#allocation2 + $0x2d8] sm:$0xff] }
  0x4b   :  { %v907_v46 = vpop.eup %906  ;;  %581 = vst [vmem:[#allocation5 + $0x170] sm:$0xff] %v905_v44  ;;  %932 = vtanh.f32 %v83_v41  ;;  %v115_v41 = vld [vmem:[#allocation2 + $0x2e0] sm:$0xff] }
  0x4c   :  { %v909_v48 = vpop.eup %908  ;;  %582 = vst [vmem:[#allocation5 + $0x178] sm:$0xff] %v907_v46  ;;  %934 = vtanh.f32 %v84_v43  ;;  %v116_v43 = vld [vmem:[#allocation2 + $0x2e8] sm:$0xff] }
  0x4d   :  { %v911_v50 = vpop.eup %910  ;;  %583 = vst [vmem:[#allocation5 + $0x180] sm:$0xff] %v909_v48  ;;  %936 = vtanh.f32 %v85_v45  ;;  %v117_v45 = vld [vmem:[#allocation2 + $0x2f0] sm:$0xff] }
  0x4e   :  { %v913_v52 = vpop.eup %912  ;;  %584 = vst [vmem:[#allocation5 + $0x188] sm:$0xff] %v911_v50  ;;  %938 = vtanh.f32 %v86_v47  ;;  %v118_v47 = vld [vmem:[#allocation2 + $0x2f8] sm:$0xff] }
  0x4f   :  { %v915_v54 = vpop.eup %914  ;;  %585 = vst [vmem:[#allocation5 + $0x190] sm:$0xff] %v913_v52  ;;  %940 = vtanh.f32 %v87_v49  ;;  %v119_v49 = vld [vmem:[#allocation2 + $0x300] sm:$0xff] }
  0x50   :  { %v917_v56 = vpop.eup %916  ;;  %586 = vst [vmem:[#allocation5 + $0x198] sm:$0xff] %v915_v54  ;;  %942 = vtanh.f32 %v88_v51  ;;  %v120_v51 = vld [vmem:[#allocation2 + $0x308] sm:$0xff] }
  0x51   :  { %v919_v58 = vpop.eup %918  ;;  %587 = vst [vmem:[#allocation5 + $0x1a0] sm:$0xff] %v917_v56  ;;  %944 = vtanh.f32 %v89_v53  ;;  %v121_v53 = vld [vmem:[#allocation2 + $0x310] sm:$0xff] }
  0x52   :  { %v921_v60 = vpop.eup %920  ;;  %588 = vst [vmem:[#allocation5 + $0x1a8] sm:$0xff] %v919_v58  ;;  %946 = vtanh.f32 %v90_v55  ;;  %v122_v55 = vld [vmem:[#allocation2 + $0x318] sm:$0xff] }
  0x53   :  { %v923_v62 = vpop.eup %922  ;;  %589 = vst [vmem:[#allocation5 + $0x1b0] sm:$0xff] %v921_v60  ;;  %948 = vtanh.f32 %v91_v57  ;;  %v123_v57 = vld [vmem:[#allocation2 + $0x320] sm:$0xff] }
  0x54   :  { %v925_v0 = vpop.eup %924  ;;  %590 = vst [vmem:[#allocation5 + $0x1b8] sm:$0xff] %v923_v62  ;;  %950 = vtanh.f32 %v92_v59  ;;  %v124_v59 = vld [vmem:[#allocation2 + $0x328] sm:$0xff] }
  0x55   :  { %v927_v2 = vpop.eup %926  ;;  %591 = vst [vmem:[#allocation5 + $0x1c0] sm:$0xff] %v925_v0  ;;  %952 = vtanh.f32 %v93_v61  ;;  %v125_v61 = vld [vmem:[#allocation2 + $0x330] sm:$0xff] }
  0x56   :  { %v929_v4 = vpop.eup %928  ;;  %592 = vst [vmem:[#allocation5 + $0x1c8] sm:$0xff] %v927_v2  ;;  %954 = vtanh.f32 %v94_v63  ;;  %v126_v63 = vld [vmem:[#allocation2 + $0x338] sm:$0xff] }
  0x57   :  { %v931_v6 = vpop.eup %930  ;;  %593 = vst [vmem:[#allocation5 + $0x1d0] sm:$0xff] %v929_v4  ;;  %956 = vtanh.f32 %v95_v1  ;;  %v127_v1 = vld [vmem:[#allocation2 + $0x340] sm:$0xff] }
  0x58   :  { %v933_v8 = vpop.eup %932  ;;  %594 = vst [vmem:[#allocation5 + $0x1d8] sm:$0xff] %v931_v6  ;;  %958 = vtanh.f32 %v96_v3  ;;  %v128_v3 = vld [vmem:[#allocation2 + $0x348] sm:$0xff] }
  0x59   :  { %v935_v10 = vpop.eup %934  ;;  %595 = vst [vmem:[#allocation5 + $0x1e0] sm:$0xff] %v933_v8  ;;  %960 = vtanh.f32 %v97_v5  ;;  %v129_v5 = vld [vmem:[#allocation2 + $0x350] sm:$0xff] }
  0x5a   :  { %v937_v12 = vpop.eup %936  ;;  %596 = vst [vmem:[#allocation5 + $0x1e8] sm:$0xff] %v935_v10  ;;  %962 = vtanh.f32 %v98_v7  ;;  %v130_v7 = vld [vmem:[#allocation2 + $0x358] sm:$0xff] }
  0x5b   :  { %v939_v14 = vpop.eup %938  ;;  %597 = vst [vmem:[#allocation5 + $0x1f0] sm:$0xff] %v937_v12  ;;  %964 = vtanh.f32 %v99_v9  ;;  %v131_v9 = vld [vmem:[#allocation2 + $0x360] sm:$0xff] }
  0x5c   :  { %v941_v16 = vpop.eup %940  ;;  %598 = vst [vmem:[#allocation5 + $0x1f8] sm:$0xff] %v939_v14  ;;  %966 = vtanh.f32 %v100_v11  ;;  %v132_v11 = vld [vmem:[#allocation2 + $0x368] sm:$0xff] }
  0x5d   :  { %v943_v18 = vpop.eup %942  ;;  %599 = vst [vmem:[#allocation5 + $0x200] sm:$0xff] %v941_v16  ;;  %968 = vtanh.f32 %v101_v13  ;;  %v133_v13 = vld [vmem:[#allocation2 + $0x370] sm:$0xff] }
  0x5e   :  { %v945_v20 = vpop.eup %944  ;;  %600 = vst [vmem:[#allocation5 + $0x208] sm:$0xff] %v943_v18  ;;  %970 = vtanh.f32 %v102_v15  ;;  %v134_v15 = vld [vmem:[#allocation2 + $0x378] sm:$0xff] }
  0x5f   :  { %v947_v22 = vpop.eup %946  ;;  %601 = vst [vmem:[#allocation5 + $0x210] sm:$0xff] %v945_v20  ;;  %972 = vtanh.f32 %v103_v17  ;;  %v135_v17 = vld [vmem:[#allocation2 + $0x380] sm:$0xff] }
  0x60   :  { %v949_v24 = vpop.eup %948  ;;  %602 = vst [vmem:[#allocation5 + $0x218] sm:$0xff] %v947_v22  ;;  %974 = vtanh.f32 %v104_v19  ;;  %v136_v19 = vld [vmem:[#allocation2 + $0x388] sm:$0xff] }
  0x61   :  { %v951_v26 = vpop.eup %950  ;;  %603 = vst [vmem:[#allocation5 + $0x220] sm:$0xff] %v949_v24  ;;  %976 = vtanh.f32 %v105_v21  ;;  %v137_v21 = vld [vmem:[#allocation2 + $0x390] sm:$0xff] }
  0x62   :  { %v953_v28 = vpop.eup %952  ;;  %604 = vst [vmem:[#allocation5 + $0x228] sm:$0xff] %v951_v26  ;;  %978 = vtanh.f32 %v106_v23  ;;  %v138_v23 = vld [vmem:[#allocation2 + $0x398] sm:$0xff] }
  0x63   :  { %v955_v30 = vpop.eup %954  ;;  %605 = vst [vmem:[#allocation5 + $0x230] sm:$0xff] %v953_v28  ;;  %980 = vtanh.f32 %v107_v25  ;;  %v139_v25 = vld [vmem:[#allocation2 + $0x3a0] sm:$0xff] }
  0x64   :  { %v957_v32 = vpop.eup %956  ;;  %606 = vst [vmem:[#allocation5 + $0x238] sm:$0xff] %v955_v30  ;;  %982 = vtanh.f32 %v108_v27  ;;  %v140_v27 = vld [vmem:[#allocation2 + $0x3a8] sm:$0xff] }
  0x65   :  { %v959_v34 = vpop.eup %958  ;;  %607 = vst [vmem:[#allocation5 + $0x240] sm:$0xff] %v957_v32  ;;  %984 = vtanh.f32 %v109_v29  ;;  %v141_v29 = vld [vmem:[#allocation2 + $0x3b0] sm:$0xff] }
  0x66   :  { %v961_v36 = vpop.eup %960  ;;  %608 = vst [vmem:[#allocation5 + $0x248] sm:$0xff] %v959_v34  ;;  %986 = vtanh.f32 %v110_v31  ;;  %v142_v31 = vld [vmem:[#allocation2 + $0x3b8] sm:$0xff] }
  0x67   :  { %v963_v38 = vpop.eup %962  ;;  %609 = vst [vmem:[#allocation5 + $0x250] sm:$0xff] %v961_v36  ;;  %988 = vtanh.f32 %v111_v33  ;;  %v143_v33 = vld [vmem:[#allocation2 + $0x3c0] sm:$0xff] }
  0x68   :  { %v965_v40 = vpop.eup %964  ;;  %610 = vst [vmem:[#allocation5 + $0x258] sm:$0xff] %v963_v38  ;;  %990 = vtanh.f32 %v112_v35  ;;  %v144_v35 = vld [vmem:[#allocation2 + $0x3c8] sm:$0xff] }
  0x69   :  { %v967_v42 = vpop.eup %966  ;;  %611 = vst [vmem:[#allocation5 + $0x260] sm:$0xff] %v965_v40  ;;  %992 = vtanh.f32 %v113_v37  ;;  %v145_v37 = vld [vmem:[#allocation2 + $0x3d0] sm:$0xff] }
  0x6a   :  { %v969_v44 = vpop.eup %968  ;;  %612 = vst [vmem:[#allocation5 + $0x268] sm:$0xff] %v967_v42  ;;  %994 = vtanh.f32 %v114_v39  ;;  %v146_v39 = vld [vmem:[#allocation2 + $0x3d8] sm:$0xff] }
  0x6b   :  { %v971_v46 = vpop.eup %970  ;;  %613 = vst [vmem:[#allocation5 + $0x270] sm:$0xff] %v969_v44  ;;  %996 = vtanh.f32 %v115_v41  ;;  %v147_v41 = vld [vmem:[#allocation2 + $0x3e0] sm:$0xff] }
  0x6c   :  { %v973_v48 = vpop.eup %972  ;;  %614 = vst [vmem:[#allocation5 + $0x278] sm:$0xff] %v971_v46  ;;  %998 = vtanh.f32 %v116_v43  ;;  %v148_v43 = vld [vmem:[#allocation2 + $0x3e8] sm:$0xff] }
  0x6d   :  { %v975_v50 = vpop.eup %974  ;;  %615 = vst [vmem:[#allocation5 + $0x280] sm:$0xff] %v973_v48  ;;  %1000 = vtanh.f32 %v117_v45  ;;  %v149_v45 = vld [vmem:[#allocation2 + $0x3f0] sm:$0xff] }
  0x6e   :  { %v977_v52 = vpop.eup %976  ;;  %616 = vst [vmem:[#allocation5 + $0x288] sm:$0xff] %v975_v50  ;;  %1002 = vtanh.f32 %v118_v47  ;;  %v150_v47 = vld [vmem:[#allocation2 + $0x3f8] sm:$0xff] }
  0x6f   :  { %v979_v54 = vpop.eup %978  ;;  %617 = vst [vmem:[#allocation5 + $0x290] sm:$0xff] %v977_v52  ;;  %1004 = vtanh.f32 %v119_v49  ;;  %v151_v49 = vld [vmem:[#allocation2 + $0x400] sm:$0xff] }
  0x70   :  { %v981_v56 = vpop.eup %980  ;;  %618 = vst [vmem:[#allocation5 + $0x298] sm:$0xff] %v979_v54  ;;  %1006 = vtanh.f32 %v120_v51  ;;  %v152_v51 = vld [vmem:[#allocation2 + $0x408] sm:$0xff] }
  0x71   :  { %v983_v58 = vpop.eup %982  ;;  %619 = vst [vmem:[#allocation5 + $0x2a0] sm:$0xff] %v981_v56  ;;  %1008 = vtanh.f32 %v121_v53  ;;  %v153_v53 = vld [vmem:[#allocation2 + $0x410] sm:$0xff] }
  0x72   :  { %v985_v60 = vpop.eup %984  ;;  %620 = vst [vmem:[#allocation5 + $0x2a8] sm:$0xff] %v983_v58  ;;  %1010 = vtanh.f32 %v122_v55  ;;  %v154_v55 = vld [vmem:[#allocation2 + $0x418] sm:$0xff] }
  0x73   :  { %v987_v62 = vpop.eup %986  ;;  %621 = vst [vmem:[#allocation5 + $0x2b0] sm:$0xff] %v985_v60  ;;  %1012 = vtanh.f32 %v123_v57  ;;  %v155_v57 = vld [vmem:[#allocation2 + $0x420] sm:$0xff] }
  0x74   :  { %v989_v0 = vpop.eup %988  ;;  %622 = vst [vmem:[#allocation5 + $0x2b8] sm:$0xff] %v987_v62  ;;  %1014 = vtanh.f32 %v124_v59  ;;  %v156_v59 = vld [vmem:[#allocation2 + $0x428] sm:$0xff] }
  0x75   :  { %v991_v2 = vpop.eup %990  ;;  %623 = vst [vmem:[#allocation5 + $0x2c0] sm:$0xff] %v989_v0  ;;  %1016 = vtanh.f32 %v125_v61  ;;  %v157_v61 = vld [vmem:[#allocation2 + $0x430] sm:$0xff] }
  0x76   :  { %v993_v4 = vpop.eup %992  ;;  %624 = vst [vmem:[#allocation5 + $0x2c8] sm:$0xff] %v991_v2  ;;  %1018 = vtanh.f32 %v126_v63  ;;  %v158_v63 = vld [vmem:[#allocation2 + $0x438] sm:$0xff] }
  0x77   :  { %v995_v6 = vpop.eup %994  ;;  %625 = vst [vmem:[#allocation5 + $0x2d0] sm:$0xff] %v993_v4  ;;  %1020 = vtanh.f32 %v127_v1  ;;  %v159_v1 = vld [vmem:[#allocation2 + $0x440] sm:$0xff] }
  0x78   :  { %v997_v8 = vpop.eup %996  ;;  %626 = vst [vmem:[#allocation5 + $0x2d8] sm:$0xff] %v995_v6  ;;  %1022 = vtanh.f32 %v128_v3  ;;  %v160_v3 = vld [vmem:[#allocation2 + $0x448] sm:$0xff] }
  0x79   :  { %v999_v10 = vpop.eup %998  ;;  %627 = vst [vmem:[#allocation5 + $0x2e0] sm:$0xff] %v997_v8  ;;  %1024 = vtanh.f32 %v129_v5  ;;  %v161_v5 = vld [vmem:[#allocation2 + $0x450] sm:$0xff] }
  0x7a   :  { %v1001_v12 = vpop.eup %1000  ;;  %628 = vst [vmem:[#allocation5 + $0x2e8] sm:$0xff] %v999_v10  ;;  %1026 = vtanh.f32 %v130_v7  ;;  %v162_v7 = vld [vmem:[#allocation2 + $0x458] sm:$0xff] }
  0x7b   :  { %v1003_v14 = vpop.eup %1002  ;;  %629 = vst [vmem:[#allocation5 + $0x2f0] sm:$0xff] %v1001_v12  ;;  %1028 = vtanh.f32 %v131_v9  ;;  %v163_v9 = vld [vmem:[#allocation2 + $0x460] sm:$0xff] }
  0x7c   :  { %v1005_v16 = vpop.eup %1004  ;;  %630 = vst [vmem:[#allocation5 + $0x2f8] sm:$0xff] %v1003_v14  ;;  %1030 = vtanh.f32 %v132_v11  ;;  %v164_v11 = vld [vmem:[#allocation2 + $0x468] sm:$0xff] }
  0x7d   :  { %v1007_v18 = vpop.eup %1006  ;;  %631 = vst [vmem:[#allocation5 + $0x300] sm:$0xff] %v1005_v16  ;;  %1032 = vtanh.f32 %v133_v13  ;;  %v165_v13 = vld [vmem:[#allocation2 + $0x470] sm:$0xff] }
  0x7e   :  { %v1009_v20 = vpop.eup %1008  ;;  %632 = vst [vmem:[#allocation5 + $0x308] sm:$0xff] %v1007_v18  ;;  %1034 = vtanh.f32 %v134_v15  ;;  %v166_v15 = vld [vmem:[#allocation2 + $0x478] sm:$0xff] }
  0x7f   :  { %v1011_v22 = vpop.eup %1010  ;;  %633 = vst [vmem:[#allocation5 + $0x310] sm:$0xff] %v1009_v20  ;;  %1036 = vtanh.f32 %v135_v17  ;;  %v167_v17 = vld [vmem:[#allocation2 + $0x480] sm:$0xff] }
  0x80   :  { %v1013_v24 = vpop.eup %1012  ;;  %634 = vst [vmem:[#allocation5 + $0x318] sm:$0xff] %v1011_v22  ;;  %1038 = vtanh.f32 %v136_v19  ;;  %v168_v19 = vld [vmem:[#allocation2 + $0x488] sm:$0xff] }
  0x81   :  { %v1015_v26 = vpop.eup %1014  ;;  %635 = vst [vmem:[#allocation5 + $0x320] sm:$0xff] %v1013_v24  ;;  %1040 = vtanh.f32 %v137_v21  ;;  %v169_v21 = vld [vmem:[#allocation2 + $0x490] sm:$0xff] }
  0x82   :  { %v1017_v28 = vpop.eup %1016  ;;  %636 = vst [vmem:[#allocation5 + $0x328] sm:$0xff] %v1015_v26  ;;  %1042 = vtanh.f32 %v138_v23  ;;  %v170_v23 = vld [vmem:[#allocation2 + $0x498] sm:$0xff] }
  0x83   :  { %v1019_v30 = vpop.eup %1018  ;;  %637 = vst [vmem:[#allocation5 + $0x330] sm:$0xff] %v1017_v28  ;;  %1044 = vtanh.f32 %v139_v25  ;;  %v171_v25 = vld [vmem:[#allocation2 + $0x4a0] sm:$0xff] }
  0x84   :  { %v1021_v32 = vpop.eup %1020  ;;  %638 = vst [vmem:[#allocation5 + $0x338] sm:$0xff] %v1019_v30  ;;  %1046 = vtanh.f32 %v140_v27  ;;  %v172_v27 = vld [vmem:[#allocation2 + $0x4a8] sm:$0xff] }
  0x85   :  { %v1023_v34 = vpop.eup %1022  ;;  %639 = vst [vmem:[#allocation5 + $0x340] sm:$0xff] %v1021_v32  ;;  %1048 = vtanh.f32 %v141_v29  ;;  %v173_v29 = vld [vmem:[#allocation2 + $0x4b0] sm:$0xff] }
  0x86   :  { %v1025_v36 = vpop.eup %1024  ;;  %640 = vst [vmem:[#allocation5 + $0x348] sm:$0xff] %v1023_v34  ;;  %1050 = vtanh.f32 %v142_v31  ;;  %v174_v31 = vld [vmem:[#allocation2 + $0x4b8] sm:$0xff] }
  0x87   :  { %v1027_v38 = vpop.eup %1026  ;;  %641 = vst [vmem:[#allocation5 + $0x350] sm:$0xff] %v1025_v36  ;;  %1052 = vtanh.f32 %v143_v33  ;;  %v175_v33 = vld [vmem:[#allocation2 + $0x4c0] sm:$0xff] }
  0x88   :  { %v1029_v40 = vpop.eup %1028  ;;  %642 = vst [vmem:[#allocation5 + $0x358] sm:$0xff] %v1027_v38  ;;  %1054 = vtanh.f32 %v144_v35  ;;  %v176_v35 = vld [vmem:[#allocation2 + $0x4c8] sm:$0xff] }
  0x89   :  { %v1031_v42 = vpop.eup %1030  ;;  %643 = vst [vmem:[#allocation5 + $0x360] sm:$0xff] %v1029_v40  ;;  %1056 = vtanh.f32 %v145_v37  ;;  %v177_v37 = vld [vmem:[#allocation2 + $0x4d0] sm:$0xff] }
  0x8a   :  { %v1033_v44 = vpop.eup %1032  ;;  %644 = vst [vmem:[#allocation5 + $0x368] sm:$0xff] %v1031_v42  ;;  %1058 = vtanh.f32 %v146_v39  ;;  %v178_v39 = vld [vmem:[#allocation2 + $0x4d8] sm:$0xff] }
  0x8b   :  { %v1035_v46 = vpop.eup %1034  ;;  %645 = vst [vmem:[#allocation5 + $0x370] sm:$0xff] %v1033_v44  ;;  %1060 = vtanh.f32 %v147_v41  ;;  %v179_v41 = vld [vmem:[#allocation2 + $0x4e0] sm:$0xff] }
  0x8c   :  { %v1037_v48 = vpop.eup %1036  ;;  %646 = vst [vmem:[#allocation5 + $0x378] sm:$0xff] %v1035_v46  ;;  %1062 = vtanh.f32 %v148_v43  ;;  %v180_v43 = vld [vmem:[#allocation2 + $0x4e8] sm:$0xff] }
  0x8d   :  { %v1039_v50 = vpop.eup %1038  ;;  %647 = vst [vmem:[#allocation5 + $0x380] sm:$0xff] %v1037_v48  ;;  %1064 = vtanh.f32 %v149_v45  ;;  %v181_v45 = vld [vmem:[#allocation2 + $0x4f0] sm:$0xff] }
  0x8e   :  { %v1041_v52 = vpop.eup %1040  ;;  %648 = vst [vmem:[#allocation5 + $0x388] sm:$0xff] %v1039_v50  ;;  %1066 = vtanh.f32 %v150_v47  ;;  %v182_v47 = vld [vmem:[#allocation2 + $0x4f8] sm:$0xff] }
  0x8f   :  { %v1043_v54 = vpop.eup %1042  ;;  %649 = vst [vmem:[#allocation5 + $0x390] sm:$0xff] %v1041_v52  ;;  %1068 = vtanh.f32 %v151_v49  ;;  %v183_v49 = vld [vmem:[#allocation2 + $0x500] sm:$0xff] }
  0x90   :  { %v1045_v56 = vpop.eup %1044  ;;  %650 = vst [vmem:[#allocation5 + $0x398] sm:$0xff] %v1043_v54  ;;  %1070 = vtanh.f32 %v152_v51  ;;  %v184_v51 = vld [vmem:[#allocation2 + $0x508] sm:$0xff] }
  0x91   :  { %v1047_v58 = vpop.eup %1046  ;;  %651 = vst [vmem:[#allocation5 + $0x3a0] sm:$0xff] %v1045_v56  ;;  %1072 = vtanh.f32 %v153_v53  ;;  %v185_v53 = vld [vmem:[#allocation2 + $0x510] sm:$0xff] }
  0x92   :  { %v1049_v60 = vpop.eup %1048  ;;  %652 = vst [vmem:[#allocation5 + $0x3a8] sm:$0xff] %v1047_v58  ;;  %1074 = vtanh.f32 %v154_v55  ;;  %v186_v55 = vld [vmem:[#allocation2 + $0x518] sm:$0xff] }
  0x93   :  { %v1051_v62 = vpop.eup %1050  ;;  %653 = vst [vmem:[#allocation5 + $0x3b0] sm:$0xff] %v1049_v60  ;;  %1076 = vtanh.f32 %v155_v57  ;;  %v187_v57 = vld [vmem:[#allocation2 + $0x520] sm:$0xff] }
  0x94   :  { %v1053_v0 = vpop.eup %1052  ;;  %654 = vst [vmem:[#allocation5 + $0x3b8] sm:$0xff] %v1051_v62  ;;  %1078 = vtanh.f32 %v156_v59  ;;  %v188_v59 = vld [vmem:[#allocation2 + $0x528] sm:$0xff] }
  0x95   :  { %v1055_v2 = vpop.eup %1054  ;;  %655 = vst [vmem:[#allocation5 + $0x3c0] sm:$0xff] %v1053_v0  ;;  %1080 = vtanh.f32 %v157_v61  ;;  %v189_v61 = vld [vmem:[#allocation2 + $0x530] sm:$0xff] }
  0x96   :  { %v1057_v4 = vpop.eup %1056  ;;  %656 = vst [vmem:[#allocation5 + $0x3c8] sm:$0xff] %v1055_v2  ;;  %1082 = vtanh.f32 %v158_v63  ;;  %v190_v63 = vld [vmem:[#allocation2 + $0x538] sm:$0xff] }
  0x97   :  { %v1059_v6 = vpop.eup %1058  ;;  %657 = vst [vmem:[#allocation5 + $0x3d0] sm:$0xff] %v1057_v4  ;;  %1084 = vtanh.f32 %v159_v1  ;;  %v191_v1 = vld [vmem:[#allocation2 + $0x540] sm:$0xff] }
  0x98   :  { %v1061_v8 = vpop.eup %1060  ;;  %658 = vst [vmem:[#allocation5 + $0x3d8] sm:$0xff] %v1059_v6  ;;  %1086 = vtanh.f32 %v160_v3  ;;  %v192_v3 = vld [vmem:[#allocation2 + $0x548] sm:$0xff] }
  0x99   :  { %v1063_v10 = vpop.eup %1062  ;;  %659 = vst [vmem:[#allocation5 + $0x3e0] sm:$0xff] %v1061_v8  ;;  %1088 = vtanh.f32 %v161_v5  ;;  %v193_v5 = vld [vmem:[#allocation2 + $0x550] sm:$0xff] }
  0x9a   :  { %v1065_v12 = vpop.eup %1064  ;;  %660 = vst [vmem:[#allocation5 + $0x3e8] sm:$0xff] %v1063_v10  ;;  %1090 = vtanh.f32 %v162_v7  ;;  %v194_v7 = vld [vmem:[#allocation2 + $0x558] sm:$0xff] }
  0x9b   :  { %v1067_v14 = vpop.eup %1066  ;;  %661 = vst [vmem:[#allocation5 + $0x3f0] sm:$0xff] %v1065_v12  ;;  %1092 = vtanh.f32 %v163_v9  ;;  %v195_v9 = vld [vmem:[#allocation2 + $0x560] sm:$0xff] }
  0x9c   :  { %v1069_v16 = vpop.eup %1068  ;;  %662 = vst [vmem:[#allocation5 + $0x3f8] sm:$0xff] %v1067_v14  ;;  %1094 = vtanh.f32 %v164_v11  ;;  %v196_v11 = vld [vmem:[#allocation2 + $0x568] sm:$0xff] }
  0x9d   :  { %v1071_v18 = vpop.eup %1070  ;;  %663 = vst [vmem:[#allocation5 + $0x400] sm:$0xff] %v1069_v16  ;;  %1096 = vtanh.f32 %v165_v13  ;;  %v197_v13 = vld [vmem:[#allocation2 + $0x570] sm:$0xff] }
  0x9e   :  { %v1073_v20 = vpop.eup %1072  ;;  %664 = vst [vmem:[#allocation5 + $0x408] sm:$0xff] %v1071_v18  ;;  %1098 = vtanh.f32 %v166_v15  ;;  %v198_v15 = vld [vmem:[#allocation2 + $0x578] sm:$0xff] }
  0x9f   :  { %v1075_v22 = vpop.eup %1074  ;;  %665 = vst [vmem:[#allocation5 + $0x410] sm:$0xff] %v1073_v20  ;;  %1100 = vtanh.f32 %v167_v17  ;;  %v199_v17 = vld [vmem:[#allocation2 + $0x580] sm:$0xff] }
  0xa0   :  { %v1077_v24 = vpop.eup %1076  ;;  %666 = vst [vmem:[#allocation5 + $0x418] sm:$0xff] %v1075_v22  ;;  %1102 = vtanh.f32 %v168_v19  ;;  %v200_v19 = vld [vmem:[#allocation2 + $0x588] sm:$0xff] }
  0xa1   :  { %v1079_v26 = vpop.eup %1078  ;;  %667 = vst [vmem:[#allocation5 + $0x420] sm:$0xff] %v1077_v24  ;;  %1104 = vtanh.f32 %v169_v21  ;;  %v201_v21 = vld [vmem:[#allocation2 + $0x590] sm:$0xff] }
  0xa2   :  { %v1081_v28 = vpop.eup %1080  ;;  %668 = vst [vmem:[#allocation5 + $0x428] sm:$0xff] %v1079_v26  ;;  %1106 = vtanh.f32 %v170_v23  ;;  %v202_v23 = vld [vmem:[#allocation2 + $0x598] sm:$0xff] }
  0xa3   :  { %v1083_v30 = vpop.eup %1082  ;;  %669 = vst [vmem:[#allocation5 + $0x430] sm:$0xff] %v1081_v28  ;;  %1108 = vtanh.f32 %v171_v25  ;;  %v203_v25 = vld [vmem:[#allocation2 + $0x5a0] sm:$0xff] }
  0xa4   :  { %v1085_v32 = vpop.eup %1084  ;;  %670 = vst [vmem:[#allocation5 + $0x438] sm:$0xff] %v1083_v30  ;;  %1110 = vtanh.f32 %v172_v27  ;;  %v204_v27 = vld [vmem:[#allocation2 + $0x5a8] sm:$0xff] }
  0xa5   :  { %v1087_v34 = vpop.eup %1086  ;;  %671 = vst [vmem:[#allocation5 + $0x440] sm:$0xff] %v1085_v32  ;;  %1112 = vtanh.f32 %v173_v29  ;;  %v205_v29 = vld [vmem:[#allocation2 + $0x5b0] sm:$0xff] }
  0xa6   :  { %v1089_v36 = vpop.eup %1088  ;;  %672 = vst [vmem:[#allocation5 + $0x448] sm:$0xff] %v1087_v34  ;;  %1114 = vtanh.f32 %v174_v31  ;;  %v206_v31 = vld [vmem:[#allocation2 + $0x5b8] sm:$0xff] }
  0xa7   :  { %v1091_v38 = vpop.eup %1090  ;;  %673 = vst [vmem:[#allocation5 + $0x450] sm:$0xff] %v1089_v36  ;;  %1116 = vtanh.f32 %v175_v33  ;;  %v207_v33 = vld [vmem:[#allocation2 + $0x5c0] sm:$0xff] }
  0xa8   :  { %v1093_v40 = vpop.eup %1092  ;;  %674 = vst [vmem:[#allocation5 + $0x458] sm:$0xff] %v1091_v38  ;;  %1118 = vtanh.f32 %v176_v35  ;;  %v208_v35 = vld [vmem:[#allocation2 + $0x5c8] sm:$0xff] }
  0xa9   :  { %v1095_v42 = vpop.eup %1094  ;;  %675 = vst [vmem:[#allocation5 + $0x460] sm:$0xff] %v1093_v40  ;;  %1120 = vtanh.f32 %v177_v37  ;;  %v209_v37 = vld [vmem:[#allocation2 + $0x5d0] sm:$0xff] }
  0xaa   :  { %v1097_v44 = vpop.eup %1096  ;;  %676 = vst [vmem:[#allocation5 + $0x468] sm:$0xff] %v1095_v42  ;;  %1122 = vtanh.f32 %v178_v39  ;;  %v210_v39 = vld [vmem:[#allocation2 + $0x5d8] sm:$0xff] }
  0xab   :  { %v1099_v46 = vpop.eup %1098  ;;  %677 = vst [vmem:[#allocation5 + $0x470] sm:$0xff] %v1097_v44  ;;  %1124 = vtanh.f32 %v179_v41  ;;  %v211_v41 = vld [vmem:[#allocation2 + $0x5e0] sm:$0xff] }
  0xac   :  { %v1101_v48 = vpop.eup %1100  ;;  %678 = vst [vmem:[#allocation5 + $0x478] sm:$0xff] %v1099_v46  ;;  %1126 = vtanh.f32 %v180_v43  ;;  %v212_v43 = vld [vmem:[#allocation2 + $0x5e8] sm:$0xff] }
  0xad   :  { %v1103_v50 = vpop.eup %1102  ;;  %679 = vst [vmem:[#allocation5 + $0x480] sm:$0xff] %v1101_v48  ;;  %1128 = vtanh.f32 %v181_v45  ;;  %v213_v45 = vld [vmem:[#allocation2 + $0x5f0] sm:$0xff] }
  0xae   :  { %v1105_v52 = vpop.eup %1104  ;;  %680 = vst [vmem:[#allocation5 + $0x488] sm:$0xff] %v1103_v50  ;;  %1130 = vtanh.f32 %v182_v47  ;;  %v214_v47 = vld [vmem:[#allocation2 + $0x5f8] sm:$0xff] }
  0xaf   :  { %v1107_v54 = vpop.eup %1106  ;;  %681 = vst [vmem:[#allocation5 + $0x490] sm:$0xff] %v1105_v52  ;;  %1132 = vtanh.f32 %v183_v49  ;;  %v215_v49 = vld [vmem:[#allocation2 + $0x600] sm:$0xff] }
  0xb0   :  { %v1109_v56 = vpop.eup %1108  ;;  %682 = vst [vmem:[#allocation5 + $0x498] sm:$0xff] %v1107_v54  ;;  %1134 = vtanh.f32 %v184_v51  ;;  %v216_v51 = vld [vmem:[#allocation2 + $0x608] sm:$0xff] }
  0xb1   :  { %v1111_v58 = vpop.eup %1110  ;;  %683 = vst [vmem:[#allocation5 + $0x4a0] sm:$0xff] %v1109_v56  ;;  %1136 = vtanh.f32 %v185_v53  ;;  %v217_v53 = vld [vmem:[#allocation2 + $0x610] sm:$0xff] }
  0xb2   :  { %v1113_v60 = vpop.eup %1112  ;;  %684 = vst [vmem:[#allocation5 + $0x4a8] sm:$0xff] %v1111_v58  ;;  %1138 = vtanh.f32 %v186_v55  ;;  %v218_v55 = vld [vmem:[#allocation2 + $0x618] sm:$0xff] }
  0xb3   :  { %v1115_v62 = vpop.eup %1114  ;;  %685 = vst [vmem:[#allocation5 + $0x4b0] sm:$0xff] %v1113_v60  ;;  %1140 = vtanh.f32 %v187_v57  ;;  %v219_v57 = vld [vmem:[#allocation2 + $0x620] sm:$0xff] }
  0xb4   :  { %v1117_v0 = vpop.eup %1116  ;;  %686 = vst [vmem:[#allocation5 + $0x4b8] sm:$0xff] %v1115_v62  ;;  %1142 = vtanh.f32 %v188_v59  ;;  %v220_v59 = vld [vmem:[#allocation2 + $0x628] sm:$0xff] }
  0xb5   :  { %v1119_v2 = vpop.eup %1118  ;;  %687 = vst [vmem:[#allocation5 + $0x4c0] sm:$0xff] %v1117_v0  ;;  %1144 = vtanh.f32 %v189_v61  ;;  %v221_v61 = vld [vmem:[#allocation2 + $0x630] sm:$0xff] }
  0xb6   :  { %v1121_v4 = vpop.eup %1120  ;;  %688 = vst [vmem:[#allocation5 + $0x4c8] sm:$0xff] %v1119_v2  ;;  %1146 = vtanh.f32 %v190_v63  ;;  %v222_v63 = vld [vmem:[#allocation2 + $0x638] sm:$0xff] }
  0xb7   :  { %v1123_v6 = vpop.eup %1122  ;;  %689 = vst [vmem:[#allocation5 + $0x4d0] sm:$0xff] %v1121_v4  ;;  %1148 = vtanh.f32 %v191_v1  ;;  %v223_v1 = vld [vmem:[#allocation2 + $0x640] sm:$0xff] }
  0xb8   :  { %v1125_v8 = vpop.eup %1124  ;;  %690 = vst [vmem:[#allocation5 + $0x4d8] sm:$0xff] %v1123_v6  ;;  %1150 = vtanh.f32 %v192_v3  ;;  %v224_v3 = vld [vmem:[#allocation2 + $0x648] sm:$0xff] }
  0xb9   :  { %v1127_v10 = vpop.eup %1126  ;;  %691 = vst [vmem:[#allocation5 + $0x4e0] sm:$0xff] %v1125_v8  ;;  %1152 = vtanh.f32 %v193_v5  ;;  %v225_v5 = vld [vmem:[#allocation2 + $0x650] sm:$0xff] }
  0xba   :  { %v1129_v12 = vpop.eup %1128  ;;  %692 = vst [vmem:[#allocation5 + $0x4e8] sm:$0xff] %v1127_v10  ;;  %1154 = vtanh.f32 %v194_v7  ;;  %v226_v7 = vld [vmem:[#allocation2 + $0x658] sm:$0xff] }
  0xbb   :  { %v1131_v14 = vpop.eup %1130  ;;  %693 = vst [vmem:[#allocation5 + $0x4f0] sm:$0xff] %v1129_v12  ;;  %1156 = vtanh.f32 %v195_v9  ;;  %v227_v9 = vld [vmem:[#allocation2 + $0x660] sm:$0xff] }
  0xbc   :  { %v1133_v16 = vpop.eup %1132  ;;  %694 = vst [vmem:[#allocation5 + $0x4f8] sm:$0xff] %v1131_v14  ;;  %1158 = vtanh.f32 %v196_v11  ;;  %v228_v11 = vld [vmem:[#allocation2 + $0x668] sm:$0xff] }
  0xbd   :  { %v1135_v18 = vpop.eup %1134  ;;  %695 = vst [vmem:[#allocation5 + $0x500] sm:$0xff] %v1133_v16  ;;  %1160 = vtanh.f32 %v197_v13  ;;  %v229_v13 = vld [vmem:[#allocation2 + $0x670] sm:$0xff] }
  0xbe   :  { %v1137_v20 = vpop.eup %1136  ;;  %696 = vst [vmem:[#allocation5 + $0x508] sm:$0xff] %v1135_v18  ;;  %1162 = vtanh.f32 %v198_v15  ;;  %v230_v15 = vld [vmem:[#allocation2 + $0x678] sm:$0xff] }
  0xbf   :  { %v1139_v22 = vpop.eup %1138  ;;  %697 = vst [vmem:[#allocation5 + $0x510] sm:$0xff] %v1137_v20  ;;  %1164 = vtanh.f32 %v199_v17  ;;  %v231_v17 = vld [vmem:[#allocation2 + $0x680] sm:$0xff] }
  0xc0   :  { %v1141_v24 = vpop.eup %1140  ;;  %698 = vst [vmem:[#allocation5 + $0x518] sm:$0xff] %v1139_v22  ;;  %1166 = vtanh.f32 %v200_v19  ;;  %v232_v19 = vld [vmem:[#allocation2 + $0x688] sm:$0xff] }
  0xc1   :  { %v1143_v26 = vpop.eup %1142  ;;  %699 = vst [vmem:[#allocation5 + $0x520] sm:$0xff] %v1141_v24  ;;  %1168 = vtanh.f32 %v201_v21  ;;  %v233_v21 = vld [vmem:[#allocation2 + $0x690] sm:$0xff] }
  0xc2   :  { %v1145_v28 = vpop.eup %1144  ;;  %700 = vst [vmem:[#allocation5 + $0x528] sm:$0xff] %v1143_v26  ;;  %1170 = vtanh.f32 %v202_v23  ;;  %v234_v23 = vld [vmem:[#allocation2 + $0x698] sm:$0xff] }
  0xc3   :  { %v1147_v30 = vpop.eup %1146  ;;  %701 = vst [vmem:[#allocation5 + $0x530] sm:$0xff] %v1145_v28  ;;  %1172 = vtanh.f32 %v203_v25  ;;  %v235_v25 = vld [vmem:[#allocation2 + $0x6a0] sm:$0xff] }
  0xc4   :  { %v1149_v32 = vpop.eup %1148  ;;  %702 = vst [vmem:[#allocation5 + $0x538] sm:$0xff] %v1147_v30  ;;  %1174 = vtanh.f32 %v204_v27  ;;  %v236_v27 = vld [vmem:[#allocation2 + $0x6a8] sm:$0xff] }
  0xc5   :  { %v1151_v34 = vpop.eup %1150  ;;  %703 = vst [vmem:[#allocation5 + $0x540] sm:$0xff] %v1149_v32  ;;  %1176 = vtanh.f32 %v205_v29  ;;  %v237_v29 = vld [vmem:[#allocation2 + $0x6b0] sm:$0xff] }
  0xc6   :  { %v1153_v36 = vpop.eup %1152  ;;  %704 = vst [vmem:[#allocation5 + $0x548] sm:$0xff] %v1151_v34  ;;  %1178 = vtanh.f32 %v206_v31  ;;  %v238_v31 = vld [vmem:[#allocation2 + $0x6b8] sm:$0xff] }
  0xc7   :  { %v1155_v38 = vpop.eup %1154  ;;  %705 = vst [vmem:[#allocation5 + $0x550] sm:$0xff] %v1153_v36  ;;  %1180 = vtanh.f32 %v207_v33  ;;  %v239_v33 = vld [vmem:[#allocation2 + $0x6c0] sm:$0xff] }
  0xc8   :  { %v1157_v40 = vpop.eup %1156  ;;  %706 = vst [vmem:[#allocation5 + $0x558] sm:$0xff] %v1155_v38  ;;  %1182 = vtanh.f32 %v208_v35  ;;  %v240_v35 = vld [vmem:[#allocation2 + $0x6c8] sm:$0xff] }
  0xc9   :  { %v1159_v42 = vpop.eup %1158  ;;  %707 = vst [vmem:[#allocation5 + $0x560] sm:$0xff] %v1157_v40  ;;  %1184 = vtanh.f32 %v209_v37  ;;  %v241_v37 = vld [vmem:[#allocation2 + $0x6d0] sm:$0xff] }
  0xca   :  { %v1161_v44 = vpop.eup %1160  ;;  %708 = vst [vmem:[#allocation5 + $0x568] sm:$0xff] %v1159_v42  ;;  %1186 = vtanh.f32 %v210_v39  ;;  %v242_v39 = vld [vmem:[#allocation2 + $0x6d8] sm:$0xff] }
  0xcb   :  { %v1163_v46 = vpop.eup %1162  ;;  %709 = vst [vmem:[#allocation5 + $0x570] sm:$0xff] %v1161_v44  ;;  %1188 = vtanh.f32 %v211_v41  ;;  %v243_v41 = vld [vmem:[#allocation2 + $0x6e0] sm:$0xff] }
  0xcc   :  { %v1165_v48 = vpop.eup %1164  ;;  %710 = vst [vmem:[#allocation5 + $0x578] sm:$0xff] %v1163_v46  ;;  %1190 = vtanh.f32 %v212_v43  ;;  %v244_v43 = vld [vmem:[#allocation2 + $0x6e8] sm:$0xff] }
  0xcd   :  { %v1167_v50 = vpop.eup %1166  ;;  %711 = vst [vmem:[#allocation5 + $0x580] sm:$0xff] %v1165_v48  ;;  %1192 = vtanh.f32 %v213_v45  ;;  %v245_v45 = vld [vmem:[#allocation2 + $0x6f0] sm:$0xff] }
  0xce   :  { %v1169_v52 = vpop.eup %1168  ;;  %712 = vst [vmem:[#allocation5 + $0x588] sm:$0xff] %v1167_v50  ;;  %1194 = vtanh.f32 %v214_v47  ;;  %v246_v47 = vld [vmem:[#allocation2 + $0x6f8] sm:$0xff] }
  0xcf   :  { %v1171_v54 = vpop.eup %1170  ;;  %713 = vst [vmem:[#allocation5 + $0x590] sm:$0xff] %v1169_v52  ;;  %1196 = vtanh.f32 %v215_v49  ;;  %v247_v49 = vld [vmem:[#allocation2 + $0x700] sm:$0xff] }
  0xd0   :  { %v1173_v56 = vpop.eup %1172  ;;  %714 = vst [vmem:[#allocation5 + $0x598] sm:$0xff] %v1171_v54  ;;  %1198 = vtanh.f32 %v216_v51  ;;  %v248_v51 = vld [vmem:[#allocation2 + $0x708] sm:$0xff] }
  0xd1   :  { %v1175_v58 = vpop.eup %1174  ;;  %715 = vst [vmem:[#allocation5 + $0x5a0] sm:$0xff] %v1173_v56  ;;  %1200 = vtanh.f32 %v217_v53  ;;  %v249_v53 = vld [vmem:[#allocation2 + $0x710] sm:$0xff] }
  0xd2   :  { %v1177_v60 = vpop.eup %1176  ;;  %716 = vst [vmem:[#allocation5 + $0x5a8] sm:$0xff] %v1175_v58  ;;  %1202 = vtanh.f32 %v218_v55  ;;  %v250_v55 = vld [vmem:[#allocation2 + $0x718] sm:$0xff] }
  0xd3   :  { %v1179_v62 = vpop.eup %1178  ;;  %717 = vst [vmem:[#allocation5 + $0x5b0] sm:$0xff] %v1177_v60  ;;  %1204 = vtanh.f32 %v219_v57  ;;  %v251_v57 = vld [vmem:[#allocation2 + $0x720] sm:$0xff] }
  0xd4   :  { %v1181_v0 = vpop.eup %1180  ;;  %718 = vst [vmem:[#allocation5 + $0x5b8] sm:$0xff] %v1179_v62  ;;  %1206 = vtanh.f32 %v220_v59  ;;  %v252_v59 = vld [vmem:[#allocation2 + $0x728] sm:$0xff] }
  0xd5   :  { %v1183_v2 = vpop.eup %1182  ;;  %719 = vst [vmem:[#allocation5 + $0x5c0] sm:$0xff] %v1181_v0  ;;  %1208 = vtanh.f32 %v221_v61  ;;  %v253_v61 = vld [vmem:[#allocation2 + $0x730] sm:$0xff] }
  0xd6   :  { %v1185_v4 = vpop.eup %1184  ;;  %720 = vst [vmem:[#allocation5 + $0x5c8] sm:$0xff] %v1183_v2  ;;  %1210 = vtanh.f32 %v222_v63  ;;  %v254_v63 = vld [vmem:[#allocation2 + $0x738] sm:$0xff] }
  0xd7   :  { %v1187_v6 = vpop.eup %1186  ;;  %721 = vst [vmem:[#allocation5 + $0x5d0] sm:$0xff] %v1185_v4  ;;  %1212 = vtanh.f32 %v223_v1  ;;  %v255_v1 = vld [vmem:[#allocation2 + $0x740] sm:$0xff] }
  0xd8   :  { %v1189_v8 = vpop.eup %1188  ;;  %722 = vst [vmem:[#allocation5 + $0x5d8] sm:$0xff] %v1187_v6  ;;  %1214 = vtanh.f32 %v224_v3  ;;  %v256_v3 = vld [vmem:[#allocation2 + $0x748] sm:$0xff] }
  0xd9   :  { %v1191_v10 = vpop.eup %1190  ;;  %723 = vst [vmem:[#allocation5 + $0x5e0] sm:$0xff] %v1189_v8  ;;  %1216 = vtanh.f32 %v225_v5  ;;  %v257_v5 = vld [vmem:[#allocation2 + $0x750] sm:$0xff] }
  0xda   :  { %v1193_v12 = vpop.eup %1192  ;;  %724 = vst [vmem:[#allocation5 + $0x5e8] sm:$0xff] %v1191_v10  ;;  %1218 = vtanh.f32 %v226_v7  ;;  %v258_v7 = vld [vmem:[#allocation2 + $0x758] sm:$0xff] }
  0xdb   :  { %v1195_v14 = vpop.eup %1194  ;;  %725 = vst [vmem:[#allocation5 + $0x5f0] sm:$0xff] %v1193_v12  ;;  %1220 = vtanh.f32 %v227_v9  ;;  %v259_v9 = vld [vmem:[#allocation2 + $0x760] sm:$0xff] }
  0xdc   :  { %v1197_v16 = vpop.eup %1196  ;;  %726 = vst [vmem:[#allocation5 + $0x5f8] sm:$0xff] %v1195_v14  ;;  %1222 = vtanh.f32 %v228_v11  ;;  %v260_v11 = vld [vmem:[#allocation2 + $0x768] sm:$0xff] }
  0xdd   :  { %v1199_v18 = vpop.eup %1198  ;;  %727 = vst [vmem:[#allocation5 + $0x600] sm:$0xff] %v1197_v16  ;;  %1224 = vtanh.f32 %v229_v13  ;;  %v261_v13 = vld [vmem:[#allocation2 + $0x770] sm:$0xff] }
  0xde   :  { %v1201_v20 = vpop.eup %1200  ;;  %728 = vst [vmem:[#allocation5 + $0x608] sm:$0xff] %v1199_v18  ;;  %1226 = vtanh.f32 %v230_v15  ;;  %v262_v15 = vld [vmem:[#allocation2 + $0x778] sm:$0xff] }
  0xdf   :  { %v1203_v22 = vpop.eup %1202  ;;  %729 = vst [vmem:[#allocation5 + $0x610] sm:$0xff] %v1201_v20  ;;  %1228 = vtanh.f32 %v231_v17  ;;  %v263_v17 = vld [vmem:[#allocation2 + $0x780] sm:$0xff] }
  0xe0   :  { %v1205_v24 = vpop.eup %1204  ;;  %730 = vst [vmem:[#allocation5 + $0x618] sm:$0xff] %v1203_v22  ;;  %1230 = vtanh.f32 %v232_v19  ;;  %v264_v19 = vld [vmem:[#allocation2 + $0x788] sm:$0xff] }
  0xe1   :  { %v1207_v26 = vpop.eup %1206  ;;  %731 = vst [vmem:[#allocation5 + $0x620] sm:$0xff] %v1205_v24  ;;  %1232 = vtanh.f32 %v233_v21  ;;  %v265_v21 = vld [vmem:[#allocation2 + $0x790] sm:$0xff] }
  0xe2   :  { %v1209_v28 = vpop.eup %1208  ;;  %732 = vst [vmem:[#allocation5 + $0x628] sm:$0xff] %v1207_v26  ;;  %1234 = vtanh.f32 %v234_v23  ;;  %v266_v23 = vld [vmem:[#allocation2 + $0x798] sm:$0xff] }
  0xe3   :  { %v1211_v30 = vpop.eup %1210  ;;  %733 = vst [vmem:[#allocation5 + $0x630] sm:$0xff] %v1209_v28  ;;  %1236 = vtanh.f32 %v235_v25  ;;  %v267_v25 = vld [vmem:[#allocation2 + $0x7a0] sm:$0xff] }
  0xe4   :  { %v1213_v32 = vpop.eup %1212  ;;  %734 = vst [vmem:[#allocation5 + $0x638] sm:$0xff] %v1211_v30  ;;  %1238 = vtanh.f32 %v236_v27  ;;  %v268_v27 = vld [vmem:[#allocation2 + $0x7a8] sm:$0xff] }
  0xe5   :  { %v1215_v34 = vpop.eup %1214  ;;  %735 = vst [vmem:[#allocation5 + $0x640] sm:$0xff] %v1213_v32  ;;  %1240 = vtanh.f32 %v237_v29  ;;  %v269_v29 = vld [vmem:[#allocation2 + $0x7b0] sm:$0xff] }
  0xe6   :  { %v1217_v36 = vpop.eup %1216  ;;  %736 = vst [vmem:[#allocation5 + $0x648] sm:$0xff] %v1215_v34  ;;  %1242 = vtanh.f32 %v238_v31  ;;  %v270_v31 = vld [vmem:[#allocation2 + $0x7b8] sm:$0xff] }
  0xe7   :  { %v1219_v38 = vpop.eup %1218  ;;  %737 = vst [vmem:[#allocation5 + $0x650] sm:$0xff] %v1217_v36  ;;  %1244 = vtanh.f32 %v239_v33  ;;  %v271_v33 = vld [vmem:[#allocation2 + $0x7c0] sm:$0xff] }
  0xe8   :  { %v1221_v40 = vpop.eup %1220  ;;  %738 = vst [vmem:[#allocation5 + $0x658] sm:$0xff] %v1219_v38  ;;  %1246 = vtanh.f32 %v240_v35  ;;  %v272_v35 = vld [vmem:[#allocation2 + $0x7c8] sm:$0xff] }
  0xe9   :  { %v1223_v42 = vpop.eup %1222  ;;  %739 = vst [vmem:[#allocation5 + $0x660] sm:$0xff] %v1221_v40  ;;  %1248 = vtanh.f32 %v241_v37  ;;  %v273_v37 = vld [vmem:[#allocation2 + $0x7d0] sm:$0xff] }
  0xea   :  { %v1225_v44 = vpop.eup %1224  ;;  %740 = vst [vmem:[#allocation5 + $0x668] sm:$0xff] %v1223_v42  ;;  %1250 = vtanh.f32 %v242_v39  ;;  %v274_v39 = vld [vmem:[#allocation2 + $0x7d8] sm:$0xff] }
  0xeb   :  { %v1227_v46 = vpop.eup %1226  ;;  %741 = vst [vmem:[#allocation5 + $0x670] sm:$0xff] %v1225_v44  ;;  %1252 = vtanh.f32 %v243_v41  ;;  %v275_v41 = vld [vmem:[#allocation2 + $0x7e0] sm:$0xff] }
  0xec   :  { %v1229_v48 = vpop.eup %1228  ;;  %742 = vst [vmem:[#allocation5 + $0x678] sm:$0xff] %v1227_v46  ;;  %1254 = vtanh.f32 %v244_v43  ;;  %v276_v43 = vld [vmem:[#allocation2 + $0x7e8] sm:$0xff] }
  0xed   :  { %v1231_v50 = vpop.eup %1230  ;;  %743 = vst [vmem:[#allocation5 + $0x680] sm:$0xff] %v1229_v48  ;;  %1256 = vtanh.f32 %v245_v45  ;;  %v277_v45 = vld [vmem:[#allocation2 + $0x7f0] sm:$0xff] }
  0xee   :  { %v1233_v52 = vpop.eup %1232  ;;  %744 = vst [vmem:[#allocation5 + $0x688] sm:$0xff] %v1231_v50  ;;  %1258 = vtanh.f32 %v246_v47  ;;  %v278_v47 = vld [vmem:[#allocation2 + $0x7f8] sm:$0xff] }
  0xef   :  { %v1235_v54 = vpop.eup %1234  ;;  %745 = vst [vmem:[#allocation5 + $0x690] sm:$0xff] %v1233_v52  ;;  %1260 = vtanh.f32 %v247_v49 }
  0xf0   :  { %v1237_v56 = vpop.eup %1236  ;;  %746 = vst [vmem:[#allocation5 + $0x698] sm:$0xff] %v1235_v54  ;;  %1262 = vtanh.f32 %v248_v51 }
  0xf1   :  { %v1239_v58 = vpop.eup %1238  ;;  %747 = vst [vmem:[#allocation5 + $0x6a0] sm:$0xff] %v1237_v56  ;;  %1264 = vtanh.f32 %v249_v53 }
  0xf2   :  { %v1241_v60 = vpop.eup %1240  ;;  %748 = vst [vmem:[#allocation5 + $0x6a8] sm:$0xff] %v1239_v58  ;;  %1266 = vtanh.f32 %v250_v55 }
  0xf3   :  { %v1243_v62 = vpop.eup %1242  ;;  %749 = vst [vmem:[#allocation5 + $0x6b0] sm:$0xff] %v1241_v60  ;;  %1268 = vtanh.f32 %v251_v57 }
  0xf4   :  { %v1245_v0 = vpop.eup %1244  ;;  %750 = vst [vmem:[#allocation5 + $0x6b8] sm:$0xff] %v1243_v62  ;;  %1270 = vtanh.f32 %v252_v59 }
  0xf5   :  { %v1247_v2 = vpop.eup %1246  ;;  %751 = vst [vmem:[#allocation5 + $0x6c0] sm:$0xff] %v1245_v0  ;;  %1272 = vtanh.f32 %v253_v61 }
  0xf6   :  { %v1249_v4 = vpop.eup %1248  ;;  %752 = vst [vmem:[#allocation5 + $0x6c8] sm:$0xff] %v1247_v2  ;;  %1274 = vtanh.f32 %v254_v63 }
  0xf7   :  { %v1251_v6 = vpop.eup %1250  ;;  %753 = vst [vmem:[#allocation5 + $0x6d0] sm:$0xff] %v1249_v4  ;;  %1276 = vtanh.f32 %v255_v1 }
  0xf8   :  { %v1253_v8 = vpop.eup %1252  ;;  %754 = vst [vmem:[#allocation5 + $0x6d8] sm:$0xff] %v1251_v6  ;;  %1278 = vtanh.f32 %v256_v3 }
  0xf9   :  { %v1255_v10 = vpop.eup %1254  ;;  %755 = vst [vmem:[#allocation5 + $0x6e0] sm:$0xff] %v1253_v8  ;;  %1280 = vtanh.f32 %v257_v5 }
  0xfa   :  { %v1257_v12 = vpop.eup %1256  ;;  %756 = vst [vmem:[#allocation5 + $0x6e8] sm:$0xff] %v1255_v10  ;;  %1282 = vtanh.f32 %v258_v7 }
  0xfb   :  { %v1259_v14 = vpop.eup %1258  ;;  %757 = vst [vmem:[#allocation5 + $0x6f0] sm:$0xff] %v1257_v12  ;;  %1284 = vtanh.f32 %v259_v9 }
  0xfc   :  { %v1261_v16 = vpop.eup %1260  ;;  %758 = vst [vmem:[#allocation5 + $0x6f8] sm:$0xff] %v1259_v14  ;;  %1286 = vtanh.f32 %v260_v11 }
  0xfd   :  { %v1263_v18 = vpop.eup %1262  ;;  %759 = vst [vmem:[#allocation5 + $0x700] sm:$0xff] %v1261_v16  ;;  %1288 = vtanh.f32 %v261_v13 }
  0xfe   :  { %v1265_v20 = vpop.eup %1264  ;;  %760 = vst [vmem:[#allocation5 + $0x708] sm:$0xff] %v1263_v18  ;;  %1290 = vtanh.f32 %v262_v15 }
  0xff   :  { %v1267_v22 = vpop.eup %1266  ;;  %761 = vst [vmem:[#allocation5 + $0x710] sm:$0xff] %v1265_v20  ;;  %1292 = vtanh.f32 %v263_v17 }
 0x100   :  { %v1269_v24 = vpop.eup %1268  ;;  %762 = vst [vmem:[#allocation5 + $0x718] sm:$0xff] %v1267_v22  ;;  %1294 = vtanh.f32 %v264_v19 }
 0x101   :  { %v1271_v26 = vpop.eup %1270  ;;  %763 = vst [vmem:[#allocation5 + $0x720] sm:$0xff] %v1269_v24  ;;  %1296 = vtanh.f32 %v265_v21 }
 0x102   :  { %v1273_v28 = vpop.eup %1272  ;;  %764 = vst [vmem:[#allocation5 + $0x728] sm:$0xff] %v1271_v26  ;;  %1298 = vtanh.f32 %v266_v23 }
 0x103   :  { %v1275_v30 = vpop.eup %1274  ;;  %765 = vst [vmem:[#allocation5 + $0x730] sm:$0xff] %v1273_v28  ;;  %1300 = vtanh.f32 %v267_v25 }
 0x104   :  { %v1277_v32 = vpop.eup %1276  ;;  %766 = vst [vmem:[#allocation5 + $0x738] sm:$0xff] %v1275_v30  ;;  %1302 = vtanh.f32 %v268_v27 }
 0x105   :  { %v1279_v34 = vpop.eup %1278  ;;  %767 = vst [vmem:[#allocation5 + $0x740] sm:$0xff] %v1277_v32  ;;  %1304 = vtanh.f32 %v269_v29 }
 0x106   :  { %v1281_v36 = vpop.eup %1280  ;;  %768 = vst [vmem:[#allocation5 + $0x748] sm:$0xff] %v1279_v34  ;;  %1306 = vtanh.f32 %v270_v31 }
 0x107   :  { %v1283_v38 = vpop.eup %1282  ;;  %769 = vst [vmem:[#allocation5 + $0x750] sm:$0xff] %v1281_v36  ;;  %1308 = vtanh.f32 %v271_v33 }
 0x108   :  { %v1285_v40 = vpop.eup %1284  ;;  %770 = vst [vmem:[#allocation5 + $0x758] sm:$0xff] %v1283_v38  ;;  %1310 = vtanh.f32 %v272_v35 }
 0x109   :  { %v1287_v42 = vpop.eup %1286  ;;  %771 = vst [vmem:[#allocation5 + $0x760] sm:$0xff] %v1285_v40  ;;  %1312 = vtanh.f32 %v273_v37 }
 0x10a   :  { %v1289_v44 = vpop.eup %1288  ;;  %772 = vst [vmem:[#allocation5 + $0x768] sm:$0xff] %v1287_v42  ;;  %1314 = vtanh.f32 %v274_v39 }
 0x10b   :  { %v1291_v46 = vpop.eup %1290  ;;  %773 = vst [vmem:[#allocation5 + $0x770] sm:$0xff] %v1289_v44  ;;  %1316 = vtanh.f32 %v275_v41 }
 0x10c   :  { %v1293_v48 = vpop.eup %1292  ;;  %774 = vst [vmem:[#allocation5 + $0x778] sm:$0xff] %v1291_v46  ;;  %1318 = vtanh.f32 %v276_v43 }
 0x10d   :  { %v1295_v49 = vpop.eup %1294  ;;  %775 = vst [vmem:[#allocation5 + $0x780] sm:$0xff] %v1293_v48  ;;  %1320 = vtanh.f32 %v277_v45 }
 0x10e   :  { %v1297_v50 = vpop.eup %1296  ;;  %776 = vst [vmem:[#allocation5 + $0x788] sm:$0xff] %v1295_v49  ;;  %1322 = vtanh.f32 %v278_v47 }
 0x10f   :  { %v1299_v51 = vpop.eup %1298  ;;  %777 = vst [vmem:[#allocation5 + $0x790] sm:$0xff] %v1297_v50 }
 0x110   :  { %v1301_v52 = vpop.eup %1300  ;;  %778 = vst [vmem:[#allocation5 + $0x798] sm:$0xff] %v1299_v51 }
 0x111   :  { %v1303_v53 = vpop.eup %1302  ;;  %779 = vst [vmem:[#allocation5 + $0x7a0] sm:$0xff] %v1301_v52 }
 0x112   :  { %v1305_v54 = vpop.eup %1304  ;;  %780 = vst [vmem:[#allocation5 + $0x7a8] sm:$0xff] %v1303_v53 }
 0x113   :  { %v1307_v55 = vpop.eup %1306  ;;  %781 = vst [vmem:[#allocation5 + $0x7b0] sm:$0xff] %v1305_v54 }
 0x114   :  { %v1309_v56 = vpop.eup %1308  ;;  %782 = vst [vmem:[#allocation5 + $0x7b8] sm:$0xff] %v1307_v55 }
 0x115   :  { %v1311_v57 = vpop.eup %1310  ;;  %783 = vst [vmem:[#allocation5 + $0x7c0] sm:$0xff] %v1309_v56 }
 0x116   :  { %v1313_v58 = vpop.eup %1312  ;;  %784 = vst [vmem:[#allocation5 + $0x7c8] sm:$0xff] %v1311_v57 }
 0x117   :  { %v1315_v59 = vpop.eup %1314  ;;  %785 = vst [vmem:[#allocation5 + $0x7d0] sm:$0xff] %v1313_v58 }
 0x118   :  { %v1317_v60 = vpop.eup %1316  ;;  %786 = vst [vmem:[#allocation5 + $0x7d8] sm:$0xff] %v1315_v59 }
 0x119   :  { %v1319_v61 = vpop.eup %1318  ;;  %787 = vst [vmem:[#allocation5 + $0x7e0] sm:$0xff] %v1317_v60 }
 0x11a   :  { %v1321_v62 = vpop.eup %1320  ;;  %788 = vst [vmem:[#allocation5 + $0x7e8] sm:$0xff] %v1319_v61 }
 0x11b   :  { %v1323_v63 = vpop.eup %1322  ;;  %789 = vst [vmem:[#allocation5 + $0x7f0] sm:$0xff] %v1321_v62 }
 0x11c   :  { %790 = vst [vmem:[#allocation5 + $0x7f8] sm:$0xff] %v1323_v63 }
 0x11d   :  { %1355 = shalt.err (!%p1352_p9)
}
 0x11e   :  { %802 = dma.vmem_to_hbm [thread:$0]  %s797_s13, 32768, %s1395_s1, [#allocation4], %s1369_s9, %s1369_s9, %s1370_s10  }
 0x11f   :  { %1366 = dma.done.wait [#allocation4], 32768  }
 0x120   :  { %1367 = vsyncadd [#allocation4], 4294934528 }
 0x121   :  { %806 = vsyncpa [#allocation3], 1 }
 0x122   :  { %807 = vsyncpa [#allocation4], 1 }

</bundles_post_ra>
